<compile_context>
chip_gen: v7x
topology: tpu7x:2x2x1
jax: 0.10.0
libtpu: 0.0.40
codegen_flags: <defaults>
</compile_context>

<pallas_src>
import jax
import jax.numpy as jnp
from jax.experimental import pallas as pl
from jax.experimental.pallas import tpu as pltpu


def pca_classifier_kernel(x_ref, w1t_ref, b1_ref, wot_ref, bo_ref, out_ref):
    # Hidden layer (PCA projection already fused into W1 by the wrapper) + ReLU.
    # TODO(synk): training-mode dropout (stateful PRNG mask) not implemented;
    # eval-mode dropout is the identity, matching module.eval() semantics.
    h = jnp.dot(x_ref[...], w1t_ref[...],
                preferred_element_type=jnp.float32)            # (tb, d_model) f32
    h = jnp.maximum(h + b1_ref[...], 0.0)

    # Output layer + numerically-stable softmax over the (small) class axis.
    logits = jnp.dot(h.astype(wot_ref.dtype), wot_ref[...],
                     preferred_element_type=jnp.float32) + bo_ref[...]
    m = jnp.max(logits, axis=1, keepdims=True)
    e = jnp.exp(logits - m)
    denom = jnp.sum(e, axis=1, keepdims=True)
    # Exact divide (not approx reciprocal) so rows sum to 1 to f32 precision.
    out_ref[...] = (e / denom).astype(out_ref.dtype)


def _round_up(v, m):
    return ((v + m - 1) // m) * m


def pca_classifier(x, pca_mean, wpca, wh, bh, wo, bo, *,
                   block_b=2048, use_bf16=True):
    """Forward pass of PCAClassifier.  Returns (B, n_classes) f32 probabilities."""
    B, D_in = x.shape
    d_model = wh.shape[0]
    n_out = wo.shape[0]

    # ---- static, wrapper-side algebraic fusion & layout prep ----------------
    W1 = wh @ wpca                                     # (d_model, D_in)
    b1 = (bh.reshape(1, d_model)
          - pca_mean.reshape(1, D_in) @ W1.T)          # (1, d_model), f32
    W1_T = W1.T                                        # (D_in, d_model)
    Wo_T = wo.T                                        # (d_model, n_out)
    bo = bo.reshape(1, n_out).astype(jnp.float32)
    b1 = b1.astype(jnp.float32)

    dt = jnp.bfloat16 if use_bf16 else jnp.float32
    x = x.astype(dt)            # ideally the producer already emits bf16
    W1_T = W1_T.astype(dt)
    Wo_T = Wo_T.astype(dt)

    # ---- batch tiling (no jnp.pad; Pallas masks the partial boundary block) -
    # Aim for >=2 grid blocks so v7x's two TensorCores both get work.
    half = _round_up(pl.cdiv(B, 2), 8)
    tb = max(8, min(block_b, half))
    if tb >= B:                  # single block anyway -> full-extent block
        tb = B
    n_blocks = pl.cdiv(B, tb)

    flops = 2 * B * d_model * (D_in + n_out)
    bytes_accessed = int(x.size * x.dtype.itemsize
                         + B * n_out * 4
                         + W1_T.size * W1_T.dtype.itemsize
                         + Wo_T.size * Wo_T.dtype.itemsize
                         + b1.size * 4 + bo.size * 4)

    out = pl.pallas_call(
        pca_classifier_kernel,
        out_shape=jax.ShapeDtypeStruct((B, n_out), jnp.float32),
        grid=(n_blocks,),
        in_specs=[
            pl.BlockSpec((tb, D_in),       lambda i: (i, 0)),   # x tile (streamed)
            pl.BlockSpec((D_in, d_model),  lambda i: (0, 0)),   # fused W1^T
            pl.BlockSpec((1, d_model),     lambda i: (0, 0)),   # fused bias b1
            pl.BlockSpec((d_model, n_out), lambda i: (0, 0)),   # Wo^T
            pl.BlockSpec((1, n_out),       lambda i: (0, 0)),   # bo
        ],
        out_specs=pl.BlockSpec((tb, n_out), lambda i: (i, 0)),
        compiler_params=pltpu.CompilerParams(
            dimension_semantics=("parallel",)),
        cost_estimate=pl.CostEstimate(flops=flops,
                                      transcendentals=B * n_out,
                                      bytes_accessed=bytes_accessed),
    )(x, W1_T, b1, Wo_T, bo)

    return out


def reference_forward(x, pca_mean, wpca, wh, bh, wo, bo):
    emb = (x - pca_mean) @ wpca.T
    h = jnp.maximum(emb @ wh.T + bh, 0.0)
    logits = h @ wo.T + bo
    return jax.nn.softmax(logits, axis=1)


if __name__ == "__main__":
    D_in, d_model, n_out = 64, 32, 2

    key = jax.random.PRNGKey(0)
    kx, kmean, kpca, kwh, kbh, kwo, kbo = jax.random.split(key, 7)

    pca_mean = jax.random.normal(kmean, (1, D_in),          dtype=jnp.float32) * 0.1
    wpca     = jax.random.normal(kpca,  (d_model, D_in),    dtype=jnp.float32) * 0.1
    wh       = jax.random.normal(kwh,   (d_model, d_model), dtype=jnp.float32) * 0.1
    bh       = jax.random.normal(kbh,   (1, d_model),       dtype=jnp.float32) * 0.1
    wo       = jax.random.normal(kwo,   (n_out, d_model),   dtype=jnp.float32) * 0.1
    bo       = jax.random.normal(kbo,   (1, n_out),         dtype=jnp.float32) * 0.1

    # Two configs: (a) small batch, f32 operands, single full-extent block;
    # (b) non-divisible batch, bf16 default path, multi-block grid with a
    # masked boundary block.
    for B, use_bf16, tol in ((8, False, 1e-4), (50, True, 2e-2)):
        x = jax.random.normal(kx, (B, D_in), dtype=jnp.float32)

        out = pca_classifier(x, pca_mean, wpca, wh, bh, wo, bo,
                             use_bf16=use_bf16)
        out = jax.block_until_ready(out)

        ref = reference_forward(x, pca_mean, wpca, wh, bh, wo, bo)
        assert out.shape == (B, n_out), out.shape
        # Tolerance: f32 path differs from the sequential reference only via
        # the fused W1 = Wh @ Wpca rounding; bf16 path additionally quantizes
        # the streamed x and resident weights (f32 accumulation throughout).
        assert jnp.allclose(out, ref, atol=tol, rtol=tol), (B, use_bf16)
        # Exact softmax normalization (no approximate reciprocal anymore).
        assert jnp.allclose(jnp.sum(out, axis=1), 1.0, atol=1e-5), (B, use_bf16)

    print("KERNEL_OK")
</pallas_src>

<mosaic_0001>
module attributes {stable_mosaic.version = 11 : i64} {
  func.func @pca_classifier_kernel(%arg0: i32, %arg1: memref<8x64xf32, #tpu.memory_space<vmem>>, %arg2: memref<64x32xf32, #tpu.memory_space<vmem>>, %arg3: memref<1x32xf32, #tpu.memory_space<vmem>>, %arg4: memref<32x2xf32, #tpu.memory_space<vmem>>, %arg5: memref<1x2xf32, #tpu.memory_space<vmem>>, %arg6: memref<8x2xf32, #tpu.memory_space<vmem>>) attributes {dimension_semantics = [#tpu.dimension_semantics<parallel>], iteration_bounds = array<i64: 1>, scalar_prefetch = 0 : i64, scratch_operands = 0 : i64, tpu.core_type = #tpu.core_type<tc>, window_params = [{transform_indices = @transform_0, window_bounds = array<i64: 8, 64>}, {pipeline_mode = #tpu.pipeline_mode<synchronous>, transform_indices = @transform_1, window_bounds = array<i64: 64, 32>}, {pipeline_mode = #tpu.pipeline_mode<synchronous>, transform_indices = @transform_2, window_bounds = array<i64: 1, 32>}, {pipeline_mode = #tpu.pipeline_mode<synchronous>, transform_indices = @transform_3, window_bounds = array<i64: 32, 2>}, {pipeline_mode = #tpu.pipeline_mode<synchronous>, transform_indices = @transform_4, window_bounds = array<i64: 1, 2>}, {transform_indices = @transform_5, window_bounds = array<i64: 8, 2>}]} {
    %c0 = arith.constant 0 : index
    %c0_0 = arith.constant 0 : index
    %0 = vector.load %arg1[%c0, %c0_0] : memref<8x64xf32, #tpu.memory_space<vmem>>, vector<8x64xf32>
    %c0_1 = arith.constant 0 : index
    %c0_2 = arith.constant 0 : index
    %1 = vector.load %arg2[%c0_1, %c0_2] : memref<64x32xf32, #tpu.memory_space<vmem>>, vector<64x32xf32>
    %cst = arith.constant dense<0.000000e+00> : vector<8x32xf32>
    %2 = tpu.matmul %0, %1, %cst {dimension_numbers = #tpu.dot_dimension_numbers<[1], [0], [0], [1], [0, 0, 1, 1], [], []>} : vector<8x64xf32>, vector<64x32xf32>, vector<8x32xf32> -> vector<8x32xf32>
    %c0_3 = arith.constant 0 : index
    %c0_4 = arith.constant 0 : index
    %3 = vector.load %arg3[%c0_3, %c0_4] : memref<1x32xf32, #tpu.memory_space<vmem>>, vector<1x32xf32>
    %4 = vector.broadcast %3 : vector<1x32xf32> to vector<8x32xf32>
    %5 = arith.addf %2, %4 : vector<8x32xf32>
    %cst_5 = arith.constant 0.000000e+00 : f32
    %6 = vector.broadcast %cst_5 : f32 to vector<8x32xf32>
    %7 = arith.maximumf %5, %6 : vector<8x32xf32>
    %c0_6 = arith.constant 0 : index
    %c0_7 = arith.constant 0 : index
    %8 = vector.load %arg4[%c0_6, %c0_7] : memref<32x2xf32, #tpu.memory_space<vmem>>, vector<32x2xf32>
    %cst_8 = arith.constant dense<0.000000e+00> : vector<8x2xf32>
    %9 = tpu.matmul %7, %8, %cst_8 {dimension_numbers = #tpu.dot_dimension_numbers<[1], [0], [0], [1], [0, 0, 1, 1], [], []>} : vector<8x32xf32>, vector<32x2xf32>, vector<8x2xf32> -> vector<8x2xf32>
    %c0_9 = arith.constant 0 : index
    %c0_10 = arith.constant 0 : index
    %10 = vector.load %arg5[%c0_9, %c0_10] : memref<1x2xf32, #tpu.memory_space<vmem>>, vector<1x2xf32>
    %11 = vector.broadcast %10 : vector<1x2xf32> to vector<8x2xf32>
    %12 = arith.addf %9, %11 : vector<8x2xf32>
    %cst_11 = arith.constant dense<0xFF800000> : vector<8xf32>
    %13 = vector.multi_reduction <maximumf>, %12, %cst_11 [1] : vector<8x2xf32> to vector<8xf32>
    %14 = vector.shape_cast %13 : vector<8xf32> to vector<8x1xf32>
    %15 = vector.broadcast %14 : vector<8x1xf32> to vector<8x2xf32>
    %16 = arith.subf %12, %15 : vector<8x2xf32>
    %17 = math.exp %16 : vector<8x2xf32>
    %cst_12 = arith.constant dense<0.000000e+00> : vector<8xf32>
    %18 = vector.multi_reduction <add>, %17, %cst_12 [1] : vector<8x2xf32> to vector<8xf32>
    %19 = vector.shape_cast %18 : vector<8xf32> to vector<8x1xf32>
    %20 = vector.broadcast %19 : vector<8x1xf32> to vector<8x2xf32>
    %21 = arith.divf %17, %20 : vector<8x2xf32>
    %c0_13 = arith.constant 0 : index
    %c0_14 = arith.constant 0 : index
    %22 = vector.load %arg6[%c0_13, %c0_14] : memref<8x2xf32, #tpu.memory_space<vmem>>, vector<8x2xf32>
    tpu.vector_store %arg6[%c0_13, %c0_14], %21 {strides = array<i32>} : memref<8x2xf32, #tpu.memory_space<vmem>>, vector<8x2xf32>,
    return
  }
  func.func @transform_0(%arg0: i32) -> (i32, i32) {
    %c0_i32 = arith.constant 0 : i32
    %c0_i32_0 = arith.constant 0 : i32
    return %arg0, %c0_i32 : i32, i32
  }
  func.func @transform_1(%arg0: i32) -> (i32, i32) {
    %c0_i32 = arith.constant 0 : i32
    %c0_i32_0 = arith.constant 0 : i32
    %c0_i32_1 = arith.constant 0 : i32
    return %c0_i32, %c0_i32_0 : i32, i32
  }
  func.func @transform_2(%arg0: i32) -> (i32, i32) {
    %c0_i32 = arith.constant 0 : i32
    %c0_i32_0 = arith.constant 0 : i32
    %c0_i32_1 = arith.constant 0 : i32
    return %c0_i32, %c0_i32_0 : i32, i32
  }
  func.func @transform_3(%arg0: i32) -> (i32, i32) {
    %c0_i32 = arith.constant 0 : i32
    %c0_i32_0 = arith.constant 0 : i32
    %c0_i32_1 = arith.constant 0 : i32
    return %c0_i32, %c0_i32_0 : i32, i32
  }
  func.func @transform_4(%arg0: i32) -> (i32, i32) {
    %c0_i32 = arith.constant 0 : i32
    %c0_i32_0 = arith.constant 0 : i32
    %c0_i32_1 = arith.constant 0 : i32
    return %c0_i32, %c0_i32_0 : i32, i32
  }
  func.func @transform_5(%arg0: i32) -> (i32, i32) {
    %c0_i32 = arith.constant 0 : i32
    %c0_i32_0 = arith.constant 0 : i32
    return %arg0, %c0_i32 : i32, i32
  }
}

</mosaic_0001>

<bundles_post_ra>
// kernel: tpu_custom_call.1
= control target key start
LH: loop header
LB: loop body
LE: loop exit
PB: predicated region body
PF: predicated region fallthrough
CT: control target
= control target key end

     0   :  { %v286_v0 = vmov 0.0|0.0   ;;  %vm287_vm0 = vmmov 0   ;;  %v288_v4 = vmov 0.0   ;;  %vm36_vm1 = vcmask 523264   ;;  %s370_s1 = inlined_call_operand.vmem [shape: f32[64,32], index: 1, kind: input, shape index: {}]   ;;  %s371_s3 = inlined_call_operand.vmem [shape: f32[32,2], index: 3, kind: input, shape index: {}]   ;;  %s372_s0 = inlined_call_operand.vmem [shape: f32[8,64], index: 0, kind: input, shape index: {}]   ;;  %s373_s2 = inlined_call_operand.vmem [shape: f32[1,32], index: 2, kind: input, shape index: {}]   ;;  %s374_s4 = inlined_call_operand.vmem [shape: f32[1,2], index: 4, kind: input, shape index: {}]   ;;  %s375_s5 = inlined_call_operand.vmem [shape: f32[8,2], index: 5, kind: output, shape index: {}]  }
   0x1   :  { %261 = vmatprep.subr.bf16.mxu0 %v286_v0  ;;  %v21_v1 = vld [vmem:[%s370_s1] sm:$0xff]  ;;  %v22_v2 = vld [vmem:[%s370_s1 + $0x8] sm:$0xff]  ;;  %v23_v3 = vld [vmem:[%s370_s1 + $0x10] sm:$0xff]  ;;  %247 = vmatprep.mubr.msk.f32.mxu0 %vm287_vm0, %v288_v4  ;;  %vm122_vm2 = vcmask 261120   ;;  %vm196_vm3 = vcmask 15360  }
   0x2   :  { %v262_v5 = vpack.c.bf16 %v22_v2, %v21_v1  ;;  %v24_v6 = vld [vmem:[%s370_s1 + $0x18] sm:$0xff]  ;;  %273 = vmatprep.subr.bf16.mxu1 %v286_v0  ;;  %258 = vmatprep.mubr.msk.f32.mxu1 %vm287_vm0, %v288_v4  ;;  %v111_v8 = vld [vmem:[%s371_s3] sm:$0xff]  ;;  %v112_v9 = vld [vmem:[%s371_s3 + $0x8] sm:$0xff] }
   0x3   :  { %v265_v7 = vpack.c.bf16 %v24_v6, %v23_v3  ;;  %v25_v10 = vld [vmem:[%s370_s1 + $0x20] sm:$0xff]  ;;  %v26_v11 = vld [vmem:[%s370_s1 + $0x28] sm:$0xff]  ;;  %v274_v12 = vpack.c.bf16 %v112_v9, %v111_v8  ;;  %v27_v14 = vld [vmem:[%s370_s1 + $0x30] sm:$0xff] }
   0x4   :  { %263 = vmatpush3.bf16.msra.mxu0 %v262_v5  ;;  %v268_v13 = vpack.c.bf16 %v26_v11, %v25_v10  ;;  %v28_v15 = vld [vmem:[%s370_s1 + $0x38] sm:$0xff]  ;;  %v20_v17 = vld [vmem:[%s372_s0] sm:$0xff]  ;;  %v113_v18 = vld [vmem:[%s371_s3 + $0x10] sm:$0xff] }
   0x5   :  { %264 = vmatprep.subr.bf16.mxu0 %v286_v0  ;;  %275 = vmatpush3.bf16.msra.mxu1 %v274_v12  ;;  %v271_v16 = vpack.c.bf16 %v28_v15, %v27_v14  ;;  %v114_v19 = vld [vmem:[%s371_s3 + $0x18] sm:$0xff]  ;;  %v213_v21 = vld [vmem:[%s373_s2] ss:$0 sm:$0xff] }
   0x6   :  { %276 = vmatprep.subr.bf16.mxu1 %v286_v0  ;;  %v277_v20 = vpack.c.bf16 %v114_v19, %v113_v18  ;;  %v215_v26 = vld [vmem:[%s374_s4] ss:$0 sm:$0xff] }
   0x8   :  { %266 = vmatpush3.bf16.msra.mxu0 %v265_v7 }
   0x9   :  { %267 = vmatprep.subr.bf16.mxu0 %v286_v0  ;;  %278 = vmatpush3.bf16.msra.mxu1 %v277_v20 }
   0xc   :  { %269 = vmatpush3.bf16.msra.mxu0 %v268_v13 }
   0xd   :  { %270 = vmatprep.subr.bf16.mxu0 %v286_v0 }
  0x10   :  { %272 = vmatpush3.bf16.msra.mxu0 %v271_v16 }
  0x13   :  { %248 = vmatmul.mubr.msk.f32.vlgmr.msra.gmra.mrb[0].mxu0 %vm36_vm1, %v20_v17 }
  0xe6   :  { %v106_v22 = vpop.f32.mrb[0].mxu0 }
  0xe7   :  { %v107_v23 = vadd.f32 %v213_v21, %v106_v22  ;;  %v249_v24 = vpop.f32.mrb[1].mxu0 }
  0xe9   :  { %v110_v25 = vmax.f32 %v107_v23, 0.0 }
  0xeb   :  { %259 = vmatmul.mubr.msk.f32.vlgmr.msra.gmra.mrb[0].mxu1 %vm122_vm2, %v110_v25 }
 0x1be   :  { %v192_v27 = vpop.f32.mrb[0].mxu1 }
 0x1bf   :  { %v193_v28 = vadd.f32 %v215_v26, %v192_v27  ;;  %v260_v29 = vpop.f32.mrb[1].mxu1 }
 0x1c1   :  { %v197_v30 = vsel %vm196_vm3, %v193_v28, -inf }
 0x1c2   :  { %198 = vmax.xlane.f32.xlu0 %v197_v30 }
 0x24f   :  { %v199_v31 = vpop.xlane.xlu0 %198 }
 0x250   :  { %v200_v32 = vsub.f32 %v193_v28, %v199_v31 }
 0x252   :  { %v201_v33 = vmul.f32 1.442695, %v200_v32 }
 0x254   :  { %282 = vpow2.f32 %v201_v33 }
 0x25e   :  { %v283_v34 = vpop.eup %282 }
 0x25f   :  { %v203_v35 = vsel %vm196_vm3, %v283_v34, 0.0 }
 0x260   :  { %204 = vadd.xlane.f32.xlu0 %v203_v35 }
 0x2ed   :  { %v205_v36 = vpop.xlane.xlu0 %204 }
 0x2ee   :  { %284 = vrcp.f32 %v205_v36 }
 0x2f8   :  { %v285_v37 = vpop.eup %284 }
 0x2f9   :  { %v207_v38 = vmul.f32 %v285_v37, %v283_v34 }
 0x2fb   :  { %208 = vst.msk [vmem:[%s375_s5] sm:$0xff] %vm196_vm3, %v207_v38 }

</bundles_post_ra>
